<compile_context>
chip_gen: v5e
topology: v5e:2x2
jax: 0.10.0
libtpu: 0.0.40
codegen_flags: <defaults>
</compile_context>

<pallas_src>
import math
from functools import partial

import jax
import jax.numpy as jnp
from jax.experimental import pallas as pl
from jax.experimental.pallas import tpu as pltpu

EMBED_DIM = 128
FF_DIM = EMBED_DIM * 4


def _layer_norm_like_torch(x):
    # (x - mean) / var  with unbiased variance (matches the PyTorch module).
    d = x.shape[-1]
    mean = jnp.mean(x, axis=-1, keepdims=True)
    centered = x - mean
    var = jnp.sum(centered * centered, axis=-1, keepdims=True) * (1.0 / (d - 1))
    return centered * pl.reciprocal(var, approx=False)


def transformer_kernel(
    tok_ref,    # (B, S, D)   f32 token embeddings
    pos_ref,    # (S, D)      f32 positional embeddings
    wqkv_ref,   # (D, 3D)     bf16 fused [Wq/sqrt(D) | Wk | Wv]
    w1_ref,     # (D, D)      bf16 linear_1 weight (laid out for x @ W)
    b1_ref,     # (1, D)      f32
    w2_ref,     # (D, 4D)     bf16
    b2_ref,     # (1, 4D)     f32
    w3_ref,     # (4D, D)     bf16
    b3_ref,     # (1, D)      f32
    o_ref,      # (B, S, D)   f32
):
    B, S, D = tok_ref.shape

    # Input embeddings = token embeddings + positional embeddings (f32).
    x = tok_ref[...] + pos_ref[...][None, :, :]            # (B, S, D)
    x2 = x.reshape(B * S, D)                               # flatten batch rows

    # --- Attention ---
    # Fused QKV projection: one (B*S, D) x (D, 3D) bf16 matmul, f32 accumulate.
    qkv = jnp.dot(x2.astype(jnp.bfloat16), wqkv_ref[...],
                  preferred_element_type=jnp.float32)      # (B*S, 3D)
    q = qkv[:, 0 * D:1 * D].reshape(B, S, D)
    k = qkv[:, 1 * D:2 * D].reshape(B, S, D)
    v = qkv[:, 2 * D:3 * D].reshape(B, S, D)

    # Scores: 1/sqrt(D) already folded into the query weight; contract on the
    # last dim of both operands (no explicit transpose).
    scores = jnp.einsum("bqd,bkd->bqk",
                        q.astype(jnp.bfloat16), k.astype(jnp.bfloat16),
                        preferred_element_type=jnp.float32)  # (B, S, S)

    # NOTE: attention mask intentionally NOT applied (matches source: softmax(scale)).
    m = jnp.max(scores, axis=-1, keepdims=True)
    e = jnp.exp(scores - m)
    probs = e * pl.reciprocal(jnp.sum(e, axis=-1, keepdims=True), approx=True)

    attn = jnp.einsum("bqk,bkd->bqd",
                      probs.astype(jnp.bfloat16), v.astype(jnp.bfloat16),
                      preferred_element_type=jnp.float32)    # (B, S, D)
    a2 = attn.reshape(B * S, D)

    # --- Feed-forward block with residuals and torch-style "layer norm" ---
    lin1 = jnp.dot(a2.astype(jnp.bfloat16), w1_ref[...],
                   preferred_element_type=jnp.float32) + b1_ref[...]
    ln1 = _layer_norm_like_torch(lin1 + x2)

    lin2 = jnp.dot(ln1.astype(jnp.bfloat16), w2_ref[...],
                   preferred_element_type=jnp.float32) + b2_ref[...]
    relu = jnp.maximum(lin2, 0.0)
    lin3 = jnp.dot(relu.astype(jnp.bfloat16), w3_ref[...],
                   preferred_element_type=jnp.float32) + b3_ref[...]
    ln2 = _layer_norm_like_torch(lin3 + ln1)

    o_ref[...] = ln2.reshape(B, S, D)


@jax.jit
def transformer_model(token_input_ids, token_attention_masks, params):
    """Full Model.forward. token_attention_masks is accepted for API parity but
    (matching the PyTorch source) has no effect on the result."""
    del token_attention_masks  # dead in the reference forward pass

    B, S = token_input_ids.shape
    D = EMBED_DIM

    # Glue: embedding gathers in plain JAX.
    tok_emb = params["embedding"][token_input_ids]            # (B, S, D) f32
    pos_emb = params["pos_embedding"][:S]                     # (S, D)    f32

    # Weight prep: fold 1/sqrt(D) into Wq, fuse QKV, cast weights to bf16.
    inv_sqrt_d = 1.0 / math.sqrt(D)
    wqkv = jnp.concatenate(
        [params["w_query"] * inv_sqrt_d, params["w_key"], params["w_value"]],
        axis=1).astype(jnp.bfloat16)                          # (D, 3D)
    w1 = params["w1"].astype(jnp.bfloat16)
    w2 = params["w2"].astype(jnp.bfloat16)
    w3 = params["w3"].astype(jnp.bfloat16)

    # Single grid-free step: the whole (tiny) problem lives in VMEM at once,
    # so there is no per-step pipeline overhead and no weight double-buffering.
    # (On v7x this leaves the second TensorCore idle; reintroduce a parallel
    #  batch grid axis only if B grows enough to amortize per-step overhead.)
    vmem = lambda: pl.BlockSpec(memory_space=pltpu.MemorySpace.VMEM)

    return pl.pallas_call(
        transformer_kernel,
        out_shape=jax.ShapeDtypeStruct((B, S, D), jnp.float32),
        in_specs=[vmem() for _ in range(9)],
        out_specs=vmem(),
    )(
        tok_emb, pos_emb, wqkv,
        w1, params["b1"],
        w2, params["b2"],
        w3, params["b3"],
    )


def init_params(key, vocab_size, max_seq_length):
    D = EMBED_DIM
    ks = jax.random.split(key, 11)
    # Deterministic synthetic params (shapes match the nn.Module definitions).
    return {
        "embedding":     jax.random.normal(ks[0], (vocab_size, D), jnp.float32) * 0.02,
        "pos_embedding": jax.random.normal(ks[1], (max_seq_length, D), jnp.float32) * 0.02,
        "w_query":       jax.random.normal(ks[2], (D, D), jnp.float32) * 0.05,
        "w_key":         jax.random.normal(ks[3], (D, D), jnp.float32) * 0.05,
        "w_value":       jax.random.normal(ks[4], (D, D), jnp.float32) * 0.05,
        # nn.Linear does x @ W^T + b; we store the already-transposed (in, out) matrix.
        "w1": jax.random.normal(ks[5], (D, D), jnp.float32) * 0.05,
        "b1": jax.random.normal(ks[6], (1, D), jnp.float32) * 0.01,
        "w2": jax.random.normal(ks[7], (D, FF_DIM), jnp.float32) * 0.05,
        "b2": jax.random.normal(ks[8], (1, FF_DIM), jnp.float32) * 0.01,
        "w3": jax.random.normal(ks[9], (FF_DIM, D), jnp.float32) * 0.05,
        "b3": jax.random.normal(ks[10], (1, D), jnp.float32) * 0.01,
    }


if __name__ == "__main__":
    key = jax.random.PRNGKey(0)
    k_ids, k_params = jax.random.split(key)

    # Small, module-consistent shapes: batch=2, seq=16, embedding_dim=128.
    B, S = 2, 16
    vocab_size = 1000
    max_seq_length = 64

    token_input_ids = jax.random.randint(k_ids, (B, S), 0, vocab_size, dtype=jnp.int32)
    token_attention_masks = jnp.ones((B, S), dtype=jnp.int32)

    params = init_params(k_params, vocab_size, max_seq_length)

    out = transformer_model(token_input_ids, token_attention_masks, params)
    jax.block_until_ready(out)
    assert out.shape == (B, S, EMBED_DIM) and out.dtype == jnp.float32
    assert bool(jnp.all(jnp.isfinite(out)))
    print("KERNEL_OK")
</pallas_src>

<mosaic_0001>
module attributes {stable_mosaic.version = 11 : i64} {
  func.func @transformer_kernel(%arg0: memref<2x16x128xf32, #tpu.memory_space<vmem>>, %arg1: memref<16x128xf32, #tpu.memory_space<vmem>>, %arg2: memref<128x384xbf16, #tpu.memory_space<vmem>>, %arg3: memref<128x128xbf16, #tpu.memory_space<vmem>>, %arg4: memref<1x128xf32, #tpu.memory_space<vmem>>, %arg5: memref<128x512xbf16, #tpu.memory_space<vmem>>, %arg6: memref<1x512xf32, #tpu.memory_space<vmem>>, %arg7: memref<512x128xbf16, #tpu.memory_space<vmem>>, %arg8: memref<1x128xf32, #tpu.memory_space<vmem>>, %arg9: memref<2x16x128xf32, #tpu.memory_space<vmem>>) attributes {dimension_semantics = [], scalar_prefetch = 0 : i64, scratch_operands = 0 : i64, tpu.core_type = #tpu.core_type<tc>} {
    %c0 = arith.constant 0 : index
    %c0_0 = arith.constant 0 : index
    %c0_1 = arith.constant 0 : index
    %0 = vector.load %arg0[%c0, %c0_0, %c0_1] : memref<2x16x128xf32, #tpu.memory_space<vmem>>, vector<2x16x128xf32>
    %c0_2 = arith.constant 0 : index
    %c0_3 = arith.constant 0 : index
    %1 = vector.load %arg1[%c0_2, %c0_3] : memref<16x128xf32, #tpu.memory_space<vmem>>, vector<16x128xf32>
    %2 = vector.shape_cast %1 : vector<16x128xf32> to vector<1x16x128xf32>
    %3 = vector.broadcast %2 : vector<1x16x128xf32> to vector<2x16x128xf32>
    %4 = arith.addf %0, %3 : vector<2x16x128xf32>
    %5 = vector.shape_cast %4 : vector<2x16x128xf32> to vector<32x128xf32>
    %6 = arith.truncf %5 : vector<32x128xf32> to vector<32x128xbf16>
    %c0_4 = arith.constant 0 : index
    %c0_5 = arith.constant 0 : index
    %7 = vector.load %arg2[%c0_4, %c0_5] : memref<128x384xbf16, #tpu.memory_space<vmem>>, vector<128x384xbf16>
    %cst = arith.constant dense<0.000000e+00> : vector<32x384xf32>
    %8 = tpu.matmul %6, %7, %cst {dimension_numbers = #tpu.dot_dimension_numbers<[1], [0], [0], [1], [0, 0, 1, 1], [], []>} : vector<32x128xbf16>, vector<128x384xbf16>, vector<32x384xf32> -> vector<32x384xf32>
    %9 = vector.extract_strided_slice %8 {offsets = [0, 0], sizes = [32, 128], strides = [1, 1]} : vector<32x384xf32> to vector<32x128xf32>
    %10 = vector.shape_cast %9 : vector<32x128xf32> to vector<2x16x128xf32>
    %11 = vector.extract_strided_slice %8 {offsets = [0, 128], sizes = [32, 128], strides = [1, 1]} : vector<32x384xf32> to vector<32x128xf32>
    %12 = vector.shape_cast %11 : vector<32x128xf32> to vector<2x16x128xf32>
    %13 = vector.extract_strided_slice %8 {offsets = [0, 256], sizes = [32, 128], strides = [1, 1]} : vector<32x384xf32> to vector<32x128xf32>
    %14 = vector.shape_cast %13 : vector<32x128xf32> to vector<2x16x128xf32>
    %15 = arith.truncf %10 : vector<2x16x128xf32> to vector<2x16x128xbf16>
    %16 = arith.truncf %12 : vector<2x16x128xf32> to vector<2x16x128xbf16>
    "tpu.trace_start"() <{level = 10 : i32, message = "bqd,bkd->bqk"}> : () -> ()
    %cst_6 = arith.constant dense<0.000000e+00> : vector<2x16x16xf32>
    %17 = tpu.matmul %15, %16, %cst_6 {dimension_numbers = #tpu.dot_dimension_numbers<[2], [2], [1], [1], [0, 0, 0, 1, 1, 1], [0], [0]>} : vector<2x16x128xbf16>, vector<2x16x128xbf16>, vector<2x16x16xf32> -> vector<2x16x16xf32>
    "tpu.trace_stop"() : () -> ()
    %cst_7 = arith.constant dense<0xFF800000> : vector<2x16xf32>
    %18 = vector.multi_reduction <maximumf>, %17, %cst_7 [2] : vector<2x16x16xf32> to vector<2x16xf32>
    %19 = vector.shape_cast %18 : vector<2x16xf32> to vector<2x16x1xf32>
    %20 = vector.broadcast %19 : vector<2x16x1xf32> to vector<2x16x16xf32>
    %21 = arith.subf %17, %20 : vector<2x16x16xf32>
    %22 = math.exp %21 : vector<2x16x16xf32>
    %cst_8 = arith.constant dense<0.000000e+00> : vector<2x16xf32>
    %23 = vector.multi_reduction <add>, %22, %cst_8 [2] : vector<2x16x16xf32> to vector<2x16xf32>
    %24 = vector.shape_cast %23 : vector<2x16xf32> to vector<2x16x1xf32>
    %25 = tpu.reciprocal %24 {approx = true} : vector<2x16x1xf32> -> vector<2x16x1xf32>
    %26 = vector.broadcast %25 : vector<2x16x1xf32> to vector<2x16x16xf32>
    %27 = arith.mulf %22, %26 : vector<2x16x16xf32>
    %28 = arith.truncf %27 : vector<2x16x16xf32> to vector<2x16x16xbf16>
    %29 = arith.truncf %14 : vector<2x16x128xf32> to vector<2x16x128xbf16>
    "tpu.trace_start"() <{level = 10 : i32, message = "bqk,bkd->bqd"}> : () -> ()
    %cst_9 = arith.constant dense<0.000000e+00> : vector<2x16x128xf32>
    %30 = tpu.matmul %28, %29, %cst_9 {dimension_numbers = #tpu.dot_dimension_numbers<[2], [1], [1], [2], [0, 0, 0, 1, 1, 2], [0], [0]>} : vector<2x16x16xbf16>, vector<2x16x128xbf16>, vector<2x16x128xf32> -> vector<2x16x128xf32>
    "tpu.trace_stop"() : () -> ()
    %31 = vector.shape_cast %30 : vector<2x16x128xf32> to vector<32x128xf32>
    %32 = arith.truncf %31 : vector<32x128xf32> to vector<32x128xbf16>
    %c0_10 = arith.constant 0 : index
    %c0_11 = arith.constant 0 : index
    %33 = vector.load %arg3[%c0_10, %c0_11] : memref<128x128xbf16, #tpu.memory_space<vmem>>, vector<128x128xbf16>
    %cst_12 = arith.constant dense<0.000000e+00> : vector<32x128xf32>
    %34 = tpu.matmul %32, %33, %cst_12 {dimension_numbers = #tpu.dot_dimension_numbers<[1], [0], [0], [1], [0, 0, 1, 1], [], []>} : vector<32x128xbf16>, vector<128x128xbf16>, vector<32x128xf32> -> vector<32x128xf32>
    %c0_13 = arith.constant 0 : index
    %c0_14 = arith.constant 0 : index
    %35 = vector.load %arg4[%c0_13, %c0_14] : memref<1x128xf32, #tpu.memory_space<vmem>>, vector<1x128xf32>
    %36 = vector.broadcast %35 : vector<1x128xf32> to vector<32x128xf32>
    %37 = arith.addf %34, %36 : vector<32x128xf32>
    %38 = arith.addf %37, %5 : vector<32x128xf32>
    %cst_15 = arith.constant dense<0.000000e+00> : vector<32xf32>
    %39 = vector.multi_reduction <add>, %38, %cst_15 [1] : vector<32x128xf32> to vector<32xf32>
    %40 = vector.shape_cast %39 : vector<32xf32> to vector<32x1xf32>
    %cst_16 = arith.constant 1.280000e+02 : f32
    %41 = vector.broadcast %cst_16 : f32 to vector<32x1xf32>
    %42 = arith.divf %40, %41 : vector<32x1xf32>
    %43 = vector.broadcast %42 : vector<32x1xf32> to vector<32x128xf32>
    %44 = arith.subf %38, %43 : vector<32x128xf32>
    %45 = arith.mulf %44, %44 : vector<32x128xf32>
    %cst_17 = arith.constant dense<0.000000e+00> : vector<32xf32>
    %46 = vector.multi_reduction <add>, %45, %cst_17 [1] : vector<32x128xf32> to vector<32xf32>
    %47 = vector.shape_cast %46 : vector<32xf32> to vector<32x1xf32>
    %cst_18 = arith.constant 0.00787401571 : f32
    %48 = vector.broadcast %cst_18 : f32 to vector<32x1xf32>
    %49 = arith.mulf %47, %48 : vector<32x1xf32>
    %50 = tpu.reciprocal %49 : vector<32x1xf32> -> vector<32x1xf32>
    %51 = vector.broadcast %50 : vector<32x1xf32> to vector<32x128xf32>
    %52 = arith.mulf %44, %51 : vector<32x128xf32>
    %53 = arith.truncf %52 : vector<32x128xf32> to vector<32x128xbf16>
    %c0_19 = arith.constant 0 : index
    %c0_20 = arith.constant 0 : index
    %54 = vector.load %arg5[%c0_19, %c0_20] : memref<128x512xbf16, #tpu.memory_space<vmem>>, vector<128x512xbf16>
    %cst_21 = arith.constant dense<0.000000e+00> : vector<32x512xf32>
    %55 = tpu.matmul %53, %54, %cst_21 {dimension_numbers = #tpu.dot_dimension_numbers<[1], [0], [0], [1], [0, 0, 1, 1], [], []>} : vector<32x128xbf16>, vector<128x512xbf16>, vector<32x512xf32> -> vector<32x512xf32>
    %c0_22 = arith.constant 0 : index
    %c0_23 = arith.constant 0 : index
    %56 = vector.load %arg6[%c0_22, %c0_23] : memref<1x512xf32, #tpu.memory_space<vmem>>, vector<1x512xf32>
    %57 = vector.broadcast %56 : vector<1x512xf32> to vector<32x512xf32>
    %58 = arith.addf %55, %57 : vector<32x512xf32>
    %cst_24 = arith.constant 0.000000e+00 : f32
    %59 = vector.broadcast %cst_24 : f32 to vector<32x512xf32>
    %60 = arith.maximumf %58, %59 : vector<32x512xf32>
    %61 = arith.truncf %60 : vector<32x512xf32> to vector<32x512xbf16>
    %c0_25 = arith.constant 0 : index
    %c0_26 = arith.constant 0 : index
    %62 = vector.load %arg7[%c0_25, %c0_26] : memref<512x128xbf16, #tpu.memory_space<vmem>>, vector<512x128xbf16>
    %cst_27 = arith.constant dense<0.000000e+00> : vector<32x128xf32>
    %63 = tpu.matmul %61, %62, %cst_27 {dimension_numbers = #tpu.dot_dimension_numbers<[1], [0], [0], [1], [0, 0, 1, 1], [], []>} : vector<32x512xbf16>, vector<512x128xbf16>, vector<32x128xf32> -> vector<32x128xf32>
    %c0_28 = arith.constant 0 : index
    %c0_29 = arith.constant 0 : index
    %64 = vector.load %arg8[%c0_28, %c0_29] : memref<1x128xf32, #tpu.memory_space<vmem>>, vector<1x128xf32>
    %65 = vector.broadcast %64 : vector<1x128xf32> to vector<32x128xf32>
    %66 = arith.addf %63, %65 : vector<32x128xf32>
    %67 = arith.addf %66, %52 : vector<32x128xf32>
    %cst_30 = arith.constant dense<0.000000e+00> : vector<32xf32>
    %68 = vector.multi_reduction <add>, %67, %cst_30 [1] : vector<32x128xf32> to vector<32xf32>
    %69 = vector.shape_cast %68 : vector<32xf32> to vector<32x1xf32>
    %cst_31 = arith.constant 1.280000e+02 : f32
    %70 = vector.broadcast %cst_31 : f32 to vector<32x1xf32>
    %71 = arith.divf %69, %70 : vector<32x1xf32>
    %72 = vector.broadcast %71 : vector<32x1xf32> to vector<32x128xf32>
    %73 = arith.subf %67, %72 : vector<32x128xf32>
    %74 = arith.mulf %73, %73 : vector<32x128xf32>
    %cst_32 = arith.constant dense<0.000000e+00> : vector<32xf32>
    %75 = vector.multi_reduction <add>, %74, %cst_32 [1] : vector<32x128xf32> to vector<32xf32>
    %76 = vector.shape_cast %75 : vector<32xf32> to vector<32x1xf32>
    %cst_33 = arith.constant 0.00787401571 : f32
    %77 = vector.broadcast %cst_33 : f32 to vector<32x1xf32>
    %78 = arith.mulf %76, %77 : vector<32x1xf32>
    %79 = tpu.reciprocal %78 : vector<32x1xf32> -> vector<32x1xf32>
    %80 = vector.broadcast %79 : vector<32x1xf32> to vector<32x128xf32>
    %81 = arith.mulf %73, %80 : vector<32x128xf32>
    %82 = vector.shape_cast %81 : vector<32x128xf32> to vector<2x16x128xf32>
    %c0_34 = arith.constant 0 : index
    %c0_35 = arith.constant 0 : index
    %c0_36 = arith.constant 0 : index
    %83 = vector.load %arg9[%c0_34, %c0_35, %c0_36] : memref<2x16x128xf32, #tpu.memory_space<vmem>>, vector<2x16x128xf32>
    tpu.vector_store %arg9[%c0_34, %c0_35, %c0_36], %82 {strides = array<i32>} : memref<2x16x128xf32, #tpu.memory_space<vmem>>, vector<2x16x128xf32>,
    return
  }
}

</mosaic_0001>

<bundles_post_ra>
// kernel: transformer_model.1
= control target key start
LH: loop header
LB: loop body
LE: loop exit
PB: predicated region body
PF: predicated region fallthrough
CT: control target
= control target key end

     0   :  { %s2607_s0 = inlined_call_operand.vmem [shape: f32[2,16,128], index: 0, kind: input, shape index: {}]   ;;  %s2608_s1 = inlined_call_operand.vmem [shape: f32[16,128], index: 1, kind: input, shape index: {}]   ;;  %s2609_s2 = inlined_call_operand.vmem [shape: bf16[128,384], index: 2, kind: input, shape index: {}]   ;;  %s2610_s3 = inlined_call_operand.vmem [shape: bf16[128,128], index: 3, kind: input, shape index: {}]   ;;  %s2611_s4 = inlined_call_operand.vmem [shape: f32[1,128], index: 4, kind: input, shape index: {}]   ;;  %s2612_s5 = inlined_call_operand.vmem [shape: bf16[128,512], index: 5, kind: input, shape index: {}]   ;;  %s2613_s6 = inlined_call_operand.vmem [shape: f32[1,512], index: 6, kind: input, shape index: {}]   ;;  %s2614_s7 = inlined_call_operand.vmem [shape: bf16[512,128], index: 7, kind: input, shape index: {}]   ;;  %s2615_s8 = inlined_call_operand.vmem [shape: f32[1,128], index: 8, kind: input, shape index: {}]   ;;  %s2616_s9 = inlined_call_operand.hbm [shape: f32[2,16,128], index: 9, kind: output, shape index: {}]  }
   0x1   :  { %v1789_v0 = vld [vmem:[%s2609_s2 + $0xac] sm:$0xf]  ;;  %v1470_v1 = vld [vmem:[%s2609_s2 + $0xb4] sm:$0xf0]  ;;  %v1786_v2 = vld [vmem:[%s2609_s2 + $0x94] sm:$0xf] }
   0x2   :  { %v1473_v3 = vor.u32 %v1789_v0, %v1470_v1  ;;  %v1458_v4 = vld [vmem:[%s2609_s2 + $0x9c] sm:$0xf0]  ;;  %v1468_v5 = vld [vmem:[%s2609_s2 + $0xa8] sm:$0xf]  ;;  %v1790_v6 = vld [vmem:[%s2609_s2 + $0xb0] sm:$0xf0] }
   0x3   :  { %v1469_v7 = vor.u32 %v1790_v6, %v1468_v5  ;;  %v1456_v8 = vld [vmem:[%s2609_s2 + $0x90] sm:$0xf]  ;;  %v1461_v9 = vor.u32 %v1786_v2, %v1458_v4  ;;  %v1787_v10 = vld [vmem:[%s2609_s2 + $0x98] sm:$0xf0]  ;;  %v1446_v12 = vld [vmem:[%s2609_s2 + $0x84] sm:$0xf0] }
   0x4   :  { %225 = vmatpush.bf16.msra.mxu1 %v1473_v3  ;;  %v1783_v11 = vld [vmem:[%s2609_s2 + $0x7c] sm:$0xf]  ;;  %v1457_v13 = vor.u32 %v1787_v10, %v1456_v8  ;;  %v1444_v14 = vld [vmem:[%s2609_s2 + $0x78] sm:$0xf]  ;;  %v1784_v15 = vld [vmem:[%s2609_s2 + $0x80] sm:$0xf0] }
   0x5   :  { %206 = vmatpush.bf16.msra.mxu0 %v1469_v7  ;;  %v1449_v16 = vor.u32 %v1783_v11, %v1446_v12  ;;  %v1780_v17 = vld [vmem:[%s2609_s2 + $0x64] sm:$0xf]  ;;  %v1434_v18 = vld [vmem:[%s2609_s2 + $0x6c] sm:$0xf0]  ;;  %v1445_v19 = vor.u32 %v1784_v15, %v1444_v14  ;;  %v1432_v20 = vld [vmem:[%s2609_s2 + $0x60] sm:$0xf] }
   0x6   :  { %v1781_v21 = vld [vmem:[%s2609_s2 + $0x68] sm:$0xf0]  ;;  %v1437_v22 = vor.u32 %v1780_v17, %v1434_v18  ;;  %v1422_v24 = vld [vmem:[%s2609_s2 + $0x54] sm:$0xf0]  ;;  %v1420_v26 = vld [vmem:[%s2609_s2 + $0x48] sm:$0xf] }
   0x7   :  { %v1777_v23 = vld [vmem:[%s2609_s2 + $0x4c] sm:$0xf]  ;;  %v1433_v25 = vor.u32 %v1781_v21, %v1432_v20  ;;  %v1778_v27 = vld [vmem:[%s2609_s2 + $0x50] sm:$0xf0] }
   0x8   :  { %226 = vmatpush.bf16.msra.mxu1 %v1461_v9 }
   0x9   :  { %207 = vmatpush.bf16.msra.mxu0 %v1457_v13 }
   0xc   :  { %227 = vmatpush.bf16.msra.mxu1 %v1449_v16 }
   0xd   :  { %208 = vmatpush.bf16.msra.mxu0 %v1445_v19 }
   0xe   :  { %14 = vsyncpa [#allocation3], 0  ;;  %v1425_v28 = vor.u32 %v1777_v23, %v1422_v24  ;;  %v1774_v29 = vld [vmem:[%s2609_s2 + $0x34] sm:$0xf]  ;;  %v1410_v30 = vld [vmem:[%s2609_s2 + $0x3c] sm:$0xf0]  ;;  %v1421_v31 = vor.u32 %v1778_v27, %v1420_v26 }
   0xf   :  { %v1408_v32 = vld [vmem:[%s2609_s2 + $0x30] sm:$0xf]  ;;  %v1775_v33 = vld [vmem:[%s2609_s2 + $0x38] sm:$0xf0]  ;;  %v1413_v34 = vor.u32 %v1774_v29, %v1410_v30  ;;  %v1398_v36 = vld [vmem:[%s2609_s2 + $0x24] sm:$0xf0] }
  0x10   :  { %228 = vmatpush.bf16.msra.mxu1 %v1437_v22  ;;  %v1771_v35 = vld [vmem:[%s2609_s2 + $0x1c] sm:$0xf]  ;;  %v1409_v37 = vor.u32 %v1775_v33, %v1408_v32  ;;  %v1396_v38 = vld [vmem:[%s2609_s2 + $0x18] sm:$0xf]  ;;  %v1772_v39 = vld [vmem:[%s2609_s2 + $0x20] sm:$0xf0] }
  0x11   :  { %209 = vmatpush.bf16.msra.mxu0 %v1433_v25  ;;  %v34_v40 = vld [vmem:[%s2607_s0] sm:$0xff]  ;;  %v1401_v41 = vor.u32 %v1771_v35, %v1398_v36  ;;  %v35_v42 = vld [vmem:[%s2607_s0 + $0x8] sm:$0xff]  ;;  %v1386_v46 = vld [vmem:[%s2609_s2 + $0xc] sm:$0xf0]  ;;  %v1397_v47 = vor.u32 %v1772_v39, %v1396_v38  ;;  %vm323_vm0 = vcmask 130048   ;;  %s1370_s11 = sshll.u32 %s2616_s9, 4  ;;  %s1371_s11 = int_to_ptr.hbm [resolvable:$true] %s1370_s11 }
  0x12   :  { %v38_v43 = vld [vmem:[%s2608_s1] sm:$0xff]  ;;  %v39_v44 = vld [vmem:[%s2608_s1 + $0x8] sm:$0xff]  ;;  %v36_v55 = vld [vmem:[%s2607_s0 + $0x10] sm:$0xff]  ;;  %s1948_s12 = smov 128   ;;  %s1949_s13 = smov 8  }
  0x13   :  { %v1768_v45 = vld [vmem:[%s2609_s2 + $0x4] sm:$0xf]  ;;  %v1384_v48 = vld [vmem:[%s2609_s2] sm:$0xf]  ;;  %v1769_v49 = vld [vmem:[%s2609_s2 + $0x8] sm:$0xf0]  ;;  %v2108_v50 = vadd.f32 %v38_v43, %v34_v40  ;;  %v2110_v51 = vadd.f32 %v39_v44, %v35_v42  ;;  %v2124_v57 = vadd.f32 %v38_v43, %v36_v55 }
  0x14   :  { %229 = vmatpush.bf16.msra.mxu1 %v1425_v28  ;;  %v1389_v52 = vor.u32 %v1768_v45, %v1386_v46  ;;  %v1385_v53 = vor.u32 %v1769_v49, %v1384_v48  ;;  %v37_v56 = vld [vmem:[%s2607_s0 + $0x18] sm:$0xff]  ;;  %v1476_v24 = vld [vmem:[%s2609_s2 + $0xb0] sm:$0xf]  ;;  %v1788_v28 = vld [vmem:[%s2609_s2 + $0xa0] sm:$0xf0] }
  0x15   :  { %210 = vmatpush.bf16.msra.mxu0 %v1421_v31  ;;  %v2114_v54 = vpack.c.bf16 %v2110_v51, %v2108_v50  ;;  %v2126_v58 = vadd.f32 %v39_v44, %v37_v56  ;;  %v1791_v25 = vld [vmem:[%s2609_s2 + $0xb8] sm:$0xf0]  ;;  %v1464_v26 = vld [vmem:[%s2609_s2 + $0x98] sm:$0xf]  ;;  %v1452_v30 = vld [vmem:[%s2609_s2 + $0x80] sm:$0xf] }
  0x16   :  { %v1477_v27 = vor.u32 %v1791_v25, %v1476_v24  ;;  %v1465_v29 = vor.u32 %v1788_v28, %v1464_v26  ;;  %v1785_v31 = vld [vmem:[%s2609_s2 + $0x88] sm:$0xf0]  ;;  %v1440_v35 = vld [vmem:[%s2609_s2 + $0x68] sm:$0xf]  ;;  %v1782_v36 = vld [vmem:[%s2609_s2 + $0x70] sm:$0xf0] }
  0x17   :  { %v2130_v59 = vpack.c.bf16 %v2126_v58, %v2124_v57  ;;  %v1428_v38 = vld [vmem:[%s2609_s2 + $0x50] sm:$0xf]  ;;  %v1779_v39 = vld [vmem:[%s2609_s2 + $0x58] sm:$0xf0]  ;;  %v1416_v43 = vld [vmem:[%s2609_s2 + $0x38] sm:$0xf] }
  0x18   :  { %230 = vmatpush.bf16.msra.mxu1 %v1413_v34  ;;  %244 = vmatpush.bf16.msra.mxu2 %v1477_v27  ;;  %v1453_v34 = vor.u32 %v1785_v31, %v1452_v30  ;;  %v1429_v42 = vor.u32 %v1779_v39, %v1428_v38  ;;  %v1776_v44 = vld [vmem:[%s2609_s2 + $0x40] sm:$0xf0]  ;;  %v1404_v46 = vld [vmem:[%s2609_s2 + $0x20] sm:$0xf]  ;;  %v1770_v55 = vld [vmem:[%s2609_s2 + $0x10] sm:$0xf0] }
  0x19   :  { %211 = vmatpush.bf16.msra.mxu0 %v1409_v37  ;;  %v1441_v37 = vor.u32 %v1782_v36, %v1440_v35  ;;  %v1417_v45 = vor.u32 %v1776_v44, %v1416_v43  ;;  %v1797_v36 = vld [vmem:[%s2610_s3 + $0x28] sm:$0xff] }
  0x1c   :  { %231 = vmatpush.bf16.msra.mxu1 %v1401_v41  ;;  %245 = vmatpush.bf16.msra.mxu2 %v1465_v29 }
  0x1d   :  { %212 = vmatpush.bf16.msra.mxu0 %v1397_v47  ;;  %v1773_v47 = vld [vmem:[%s2609_s2 + $0x28] sm:$0xf0] }
  0x20   :  { %232 = vmatpush.bf16.msra.mxu1 %v1389_v52  ;;  %246 = vmatpush.bf16.msra.mxu2 %v1453_v34  ;;  %v1405_v52 = vor.u32 %v1773_v47, %v1404_v46  ;;  %v1798_v34 = vld [vmem:[%s2610_s3 + $0x30] sm:$0xff]  ;;  %v1795_v46 = vld [vmem:[%s2610_s3 + $0x18] sm:$0xff] }
  0x21   :  { %213 = vmatpush.bf16.msra.mxu0 %v1385_v53  ;;  %v1392_v53 = vld [vmem:[%s2609_s2 + $0x8] sm:$0xf] }
  0x22   :  { %v1393_v56 = vor.u32 %v1770_v55, %v1392_v53 }
  0x23   :  { %233 = vmatmul.bf16.vlgmr.msra.gmra.mxu1 %v2114_v54 }
  0x24   :  { %214 = vmatmul.bf16.vlgmr.msra.gmra.mxu0 %v2114_v54  ;;  %247 = vmatpush.bf16.msra.mxu2 %v1441_v37 }
  0x28   :  { %248 = vmatpush.bf16.msra.mxu2 %v1429_v42  ;;  %v1796_v42 = vld [vmem:[%s2610_s3 + $0x20] sm:$0xff] }
  0x2c   :  { %249 = vmatpush.bf16.msra.mxu2 %v1417_v45 }
  0x30   :  { %250 = vmatpush.bf16.msra.mxu2 %v1405_v52 }
  0x33   :  { %238 = vmatmul.bf16.gmra.mxu1 %v2130_v59 }
  0x34   :  { %219 = vmatmul.bf16.gmra.mxu0 %v2130_v59  ;;  %251 = vmatpush.bf16.msra.mxu2 %v1393_v56 }
  0x37   :  { %252 = vmatmul.bf16.vlgmr.msra.gmra.mxu2 %v2114_v54 }
  0x47   :  { %257 = vmatmul.bf16.gmra.mxu2 %v2130_v59 }
  0xa0   :  { %v234_v60 = vpop.f32.mrf.mxu1 }
  0xa1   :  { %v215_v61 = vpop.f32.mrf.mxu0  ;;  %v267_v62 = vpack.c.bf16 %v234_v60, %v234_v60 }
  0xa2   :  { %v263_v4 = vpack.c.bf16 %v215_v61, %v215_v61 }
  0xa3   :  { %v279_v2 = vunpack.c.l.b16 %v267_v62 }
  0xa4   :  { %v273_v7 = vunpack.c.l.b16 %v263_v4 }
  0xa8   :  { %v236_v63 = vpop.f32.mrf.mxu1 }
  0xa9   :  { %v268_v0 = vpack.c.bf16 %v236_v63, %v236_v63  ;;  %v217_v1 = vpop.f32.mrf.mxu0 }
  0xaa   :  { %v264_v5 = vpack.c.bf16 %v217_v1, %v217_v1 }
  0xab   :  { %v280_v3 = vunpack.c.l.b16 %v268_v0 }
  0xac   :  { %v274_v8 = vunpack.c.l.b16 %v264_v5 }
  0xad   :  { %v281_v6 = vpack.c.b16 %v280_v3, %v279_v2 }
  0xae   :  { %v275_v11 = vpack.c.b16 %v274_v8, %v273_v7 }
  0xaf   :  { %290 = vmatpush.bf16.xpose.msra.mxu3 %v281_v6 }
  0xb0   :  { %v239_v9 = vpop.f32.mrf.mxu1 }
  0xb1   :  { %v220_v10 = vpop.f32.mrf.mxu0  ;;  %v269_v12 = vpack.c.bf16 %v239_v9, %v239_v9 }
  0xb2   :  { %v265_v18 = vpack.c.bf16 %v220_v10, %v220_v10 }
  0xb3   :  { %v305_v16 = vunpack.c.l.b16 %v269_v12 }
  0xb4   :  { %v299_v21 = vunpack.c.l.b16 %v265_v18 }
  0xb6   :  { %291 = vmatmul.bf16.vlgmr.msra.gmra.mxu3 %v275_v11 }
  0xb8   :  { %v241_v13 = vpop.f32.mrf.mxu1 }
  0xb9   :  { %v270_v14 = vpack.c.bf16 %v241_v13, %v241_v13  ;;  %v222_v15 = vpop.f32.mrf.mxu0 }
  0xba   :  { %v266_v19 = vpack.c.bf16 %v222_v15, %v222_v15 }
  0xbb   :  { %v306_v17 = vunpack.c.l.b16 %v270_v14 }
  0xbc   :  { %v300_v22 = vunpack.c.l.b16 %v266_v19 }
  0xbd   :  { %v307_v20 = vpack.c.b16 %v306_v17, %v305_v16  ;;  %v253_v16 = vpop.f32.mrf.mxu2 }
  0xbe   :  { %v301_v23 = vpack.c.b16 %v300_v22, %v299_v21  ;;  %v372_v17 = vpack.c.bf16 %v253_v16, %v253_v16 }
  0xbf   :  { %316 = vmatpush.bf16.xpose.msrb.mxu3 %v307_v20 }
  0xc0   :  { %v383_v19 = vunpack.c.l.b16 %v372_v17 }
  0xc5   :  { %v255_v18 = vpop.f32.mrf.mxu2 }
  0xc6   :  { %317 = vmatmul.bf16.vlgmr.msrb.gmra.mxu3 %v301_v23  ;;  %v373_v20 = vpack.c.bf16 %v255_v18, %v255_v18 }
  0xc8   :  { %v384_v21 = vunpack.c.l.b16 %v373_v20 }
  0xca   :  { %v385_v22 = vpack.c.b16 %v384_v21, %v383_v19  ;;  %v1946_v19 = vmov 128.0  }
  0xcc   :  { %397 = vmatpush.bf16.msra.mxu3 %v385_v22 }
  0xcd   :  { %v258_v23 = vpop.f32.mrf.mxu2 }
  0xce   :  { %v374_v24 = vpack.c.bf16 %v258_v23, %v258_v23 }
  0xd0   :  { %v411_v26 = vunpack.c.l.b16 %v374_v24 }
  0xd5   :  { %v260_v25 = vpop.f32.mrf.mxu2 }
  0xd6   :  { %v375_v27 = vpack.c.bf16 %v260_v25, %v260_v25 }
  0xd8   :  { %v412_v28 = vunpack.c.l.b16 %v375_v27 }
  0xda   :  { %v413_v29 = vpack.c.b16 %v412_v28, %v411_v26 }
  0xdc   :  { %425 = vmatpush.bf16.msrb.mxu3 %v413_v29 }
 0x139   :  { %v292_v32 = vpop.f32.mrf.mxu3 }
 0x13a   :  { %v324_v33 = vsel %vm323_vm0, %v292_v32, -inf }
 0x13b   :  { %325 = vmax.xlane.f32.xlu0 %v324_v33 }
 0x141   :  { %v294_v40 = vpop.f32.mrf.mxu3 }
 0x142   :  { %v327_v41 = vsel %vm323_vm0, %v294_v40, -inf }
 0x143   :  { %328 = vmax.xlane.f32.xlu0 %v327_v41 }
 0x149   :  { %v318_v48 = vpop.f32.mrf.mxu3 }
 0x14a   :  { %v330_v49 = vsel %vm323_vm0, %v318_v48, -inf }
 0x14b   :  { %331 = vmax.xlane.f32.xlu1 %v330_v49 }
 0x151   :  { %v320_v60 = vpop.f32.mrf.mxu3 }
 0x152   :  { %v333_v61 = vsel %vm323_vm0, %v320_v60, -inf }
 0x153   :  { %334 = vmax.xlane.f32.xlu1 %v333_v61 }
 0x1ae   :  { %v326_v62 = vpop.xlane.xlu0 %325 }
 0x1af   :  { %v336_v63 = vsub.f32 %v292_v32, %v326_v62  ;;  %v1799_v32 = vld [vmem:[%s2610_s3 + $0x38] sm:$0xff] }
 0x1b0   :  { %502 = vmatpush.bf16.msrb.mxu0 %v1799_v32 }
 0x1b1   :  { %v340_v0 = vmul.f32 1.442695, %v336_v63  ;;  %v1794_v63 = vld [vmem:[%s2610_s3 + $0x10] sm:$0xff] }
 0x1b3   :  { %1886 = vpow2.f32 %v340_v0  ;;  %v1793_v0 = vld [vmem:[%s2610_s3 + $0x8] sm:$0xff] }
 0x1b4   :  { %503 = vmatpush.bf16.msrb.mxu0 %v1798_v34 }
 0x1b6   :  { %v329_v1 = vpop.xlane.xlu0 %328 }
 0x1b7   :  { %v337_v2 = vsub.f32 %v294_v40, %v329_v1  ;;  %v1792_v1 = vld [vmem:[%s2610_s3] sm:$0xff] }
 0x1b8   :  { %504 = vmatpush.bf16.msrb.mxu0 %v1797_v36 }
 0x1b9   :  { %v1887_v3 = vpop.eup %1886  ;;  %v342_v4 = vmul.f32 1.442695, %v337_v2 }
 0x1ba   :  { %v348_v5 = vsel %vm323_vm0, %v1887_v3, 0.0 }
 0x1bb   :  { %1888 = vpow2.f32 %v342_v4  ;;  %349 = vadd.xlane.f32.xlu2 %v348_v5 }
 0x1bc   :  { %505 = vmatpush.bf16.msrb.mxu0 %v1796_v42  ;;  %v1628_v42 = vld [vmem:[%s2612_s5 + $0xf0] sm:$0xf0] }
 0x1be   :  { %v332_v6 = vpop.xlane.xlu1 %331 }
 0x1bf   :  { %v338_v7 = vsub.f32 %v318_v48, %v332_v6 }
 0x1c0   :  { %506 = vmatpush.bf16.msrb.mxu0 %v1795_v46 }
 0x1c1   :  { %v1889_v8 = vpop.eup %1888  ;;  %v344_v9 = vmul.f32 1.442695, %v338_v7 }
 0x1c2   :  { %v351_v54 = vsel %vm323_vm0, %v1889_v8, 0.0 }
 0x1c3   :  { %1890 = vpow2.f32 %v344_v9  ;;  %352 = vadd.xlane.f32.xlu2 %v351_v54 }
 0x1c4   :  { %507 = vmatpush.bf16.msrb.mxu0 %v1794_v63 }
 0x1c6   :  { %v335_v59 = vpop.xlane.xlu1 %334 }
 0x1c7   :  { %v339_v10 = vsub.f32 %v320_v60, %v335_v59 }
 0x1c8   :  { %508 = vmatpush.bf16.msrb.mxu0 %v1793_v0 }
 0x1c9   :  { %v1891_v11 = vpop.eup %1890  ;;  %v346_v12 = vmul.f32 1.442695, %v339_v10 }
 0x1ca   :  { %v354_v13 = vsel %vm323_vm0, %v1891_v11, 0.0 }
 0x1cb   :  { %1892 = vpow2.f32 %v346_v12  ;;  %355 = vadd.xlane.f32.xlu0 %v354_v13 }
 0x1cc   :  { %509 = vmatpush.bf16.msrb.mxu0 %v1792_v1  ;;  %v1825_v1 = vld [vmem:[%s2612_s5 + $0xcc] sm:$0xf] }
 0x1d1   :  { %v1893_v14 = vpop.eup %1892 }
 0x1d2   :  { %v357_v15 = vsel %vm323_vm0, %v1893_v14, 0.0 }
 0x1d3   :  { %358 = vadd.xlane.f32.xlu1 %v357_v15 }
 0x22e   :  { %v350_v30 = vpop.xlane.xlu2 %349 }
 0x22f   :  { %1894 = vrcp.f32 %v350_v30 }
 0x235   :  { %v1895_v33 = vpop.eup %1894 }
 0x236   :  { %v353_v31 = vpop.xlane.xlu2 %352  ;;  %v364_v35 = vmul.f32 %v1895_v33, %v1887_v3 }
 0x237   :  { %1896 = vrcp.f32 %v353_v31 }
 0x238   :  { %v368_v38 = vpack.c.bf16 %v364_v35, %v364_v35 }
 0x23a   :  { %v378_v43 = vunpack.c.l.b16 %v368_v38  ;;  %v1626_v38 = vld [vmem:[%s2612_s5 + $0xe0] sm:$0xf] }
 0x23d   :  { %v1897_v37 = vpop.eup %1896 }
 0x23e   :  { %v365_v39 = vmul.f32 %v1897_v37, %v1889_v8  ;;  %v356_v40 = vpop.xlane.xlu0 %355  ;;  %v1884_v8 = vld [vmem:[%s2611_s4] ss:$0 sm:$0xff] }
 0x23f   :  { %1898 = vrcp.f32 %v356_v40  ;;  %v1828_v40 = vld [vmem:[%s2612_s5 + $0xe4] sm:$0xf] }
 0x240   :  { %v369_v41 = vpack.c.bf16 %v365_v39, %v365_v39  ;;  %v1830_v39 = vld [vmem:[%s2612_s5 + $0xec] sm:$0xf0] }
 0x242   :  { %v379_v44 = vunpack.c.l.b16 %v369_v41  ;;  %v1627_v41 = vor.u32 %v1830_v39, %v1626_v38  ;;  %v1546_v39 = vld [vmem:[%s2612_s5 + $0x40] sm:$0xf] }
 0x244   :  { %v380_v45 = vpack.c.b16 %v379_v44, %v378_v43  ;;  %v1634_v43 = vld [vmem:[%s2612_s5 + $0xe8] sm:$0xf]  ;;  %v1831_v44 = vld [vmem:[%s2612_s5 + $0xf4] sm:$0xf0]  ;;  %828 = vmatpush.bf16.msrb.mxu1 %v1627_v41  ;;  %v1808_v41 = vld [vmem:[%s2612_s5 + $0x44] sm:$0xf] }
 0x245   :  { %v1899_v48 = vpop.eup %1898  ;;  %v1635_v46 = vor.u32 %v1831_v44, %v1634_v43  ;;  %v1548_v43 = vld [vmem:[%s2612_s5 + $0x50] sm:$0xf0]  ;;  %v1554_v44 = vld [vmem:[%s2612_s5 + $0x48] sm:$0xf] }
 0x246   :  { %1478 = vmatmul.msk.bf16.vlgmr.msra.gmra.mxu3 %vm323_vm0, %v380_v45  ;;  %v359_v47 = vpop.xlane.xlu1 %358  ;;  %v366_v49 = vmul.f32 %v1899_v48, %v1891_v11  ;;  %v1631_v45 = vor.u32 %v1828_v40, %v1628_v42  ;;  %v1636_v48 = vld [vmem:[%s2612_s5 + $0xf8] sm:$0xf0]  ;;  %v1810_v40 = vld [vmem:[%s2612_s5 + $0x4c] sm:$0xf0] }
 0x247   :  { %1900 = vrcp.f32 %v359_v47  ;;  %v1829_v47 = vld [vmem:[%s2612_s5 + $0xec] sm:$0xf]  ;;  %866 = vmatpush.bf16.msra.mxu3 %v1635_v46  ;;  %v1547_v42 = vor.u32 %v1810_v40, %v1546_v39  ;;  %v1551_v46 = vor.u32 %v1808_v41, %v1548_v43 }
 0x248   :  { %v370_v53 = vpack.c.bf16 %v366_v49, %v366_v49  ;;  %1902 = vrcp.f32 %v1946_v19  ;;  %v1639_v49 = vor.u32 %v1829_v47, %v1636_v48  ;;  %847 = vmatpush.bf16.msrb.mxu2 %v1631_v45  ;;  %v1586_v19 = vld [vmem:[%s2612_s5 + $0x88] sm:$0xf]  ;;  %v1811_v45 = vld [vmem:[%s2612_s5 + $0x54] sm:$0xf0]  ;;  %v1809_v48 = vld [vmem:[%s2612_s5 + $0x4c] sm:$0xf] }
 0x249   :  { %v1555_v47 = vor.u32 %v1811_v45, %v1554_v44 }
 0x24a   :  { %v406_v60 = vunpack.c.l.b16 %v370_v53  ;;  %v1826_v53 = vld [vmem:[%s2612_s5 + $0xcc] sm:$0xf0]  ;;  %885 = vmatpush.bf16.msra.mxu0 %v1639_v49  ;;  %v1556_v49 = vld [vmem:[%s2612_s5 + $0x58] sm:$0xf0] }
 0x24d   :  { %v1901_v52 = vpop.eup %1900 }
 0x24e   :  { %v367_v55 = vmul.f32 %v1901_v52, %v1893_v14  ;;  %v1903_v20 = vpop.eup %1902  ;;  %v1610_v52 = vld [vmem:[%s2612_s5 + $0xc0] sm:$0xf] }
 0x24f   :  { %vm538_vm1 = vweird.f32 %v1903_v20 }
 0x250   :  { %v371_v56 = vpack.c.bf16 %v367_v55, %v367_v55  ;;  %v1824_v55 = vld [vmem:[%s2612_s5 + $0xc4] sm:$0xf] }
 0x252   :  { %v407_v61 = vunpack.c.l.b16 %v371_v56  ;;  %v1611_v56 = vor.u32 %v1826_v53, %v1610_v52  ;;  %v1559_v52 = vor.u32 %v1809_v48, %v1556_v49  ;;  %v1530_v53 = vld [vmem:[%s2612_s5 + $0x20] sm:$0xf] }
 0x254   :  { %v408_v62 = vpack.c.b16 %v407_v61, %v406_v60  ;;  %v1612_v60 = vld [vmem:[%s2612_s5 + $0xd0] sm:$0xf0]  ;;  %v1618_v61 = vld [vmem:[%s2612_s5 + $0xc8] sm:$0xf]  ;;  %829 = vmatpush.bf16.msrb.mxu1 %v1611_v56  ;;  %v1804_v56 = vld [vmem:[%s2612_s5 + $0x24] sm:$0xf] }
 0x255   :  { %v1615_v63 = vor.u32 %v1824_v55, %v1612_v60  ;;  %v1806_v55 = vld [vmem:[%s2612_s5 + $0x2c] sm:$0xf0] }
 0x256   :  { %1479 = vmatmul.msk.bf16.vlgmr.msrb.gmra.mxu3 %vm323_vm0, %v408_v62  ;;  %v1827_v62 = vld [vmem:[%s2612_s5 + $0xd4] sm:$0xf0]  ;;  %v1531_v60 = vor.u32 %v1806_v55, %v1530_v53 }
 0x257   :  { %v1619_v0 = vor.u32 %v1827_v62, %v1618_v61  ;;  %848 = vmatpush.bf16.msrb.mxu2 %v1615_v63  ;;  %v1532_v61 = vld [vmem:[%s2612_s5 + $0x30] sm:$0xf0]  ;;  %v1538_v62 = vld [vmem:[%s2612_s5 + $0x28] sm:$0xf]  ;;  %v1807_v63 = vld [vmem:[%s2612_s5 + $0x34] sm:$0xf0] }
 0x259   :  { %867 = vmatpush.bf16.msra.mxu3 %v1619_v0  ;;  %v1535_v0 = vor.u32 %v1804_v56, %v1532_v61 }
 0x2c9   :  { %v399_v2 = vpop.f32.mrf.mxu3 }
 0x2d1   :  { %v401_v3 = vpop.f32.mrf.mxu3 }
 0x2d2   :  { %v432_v4 = vpack.c.bf16 %v401_v3, %v399_v2  ;;  %v1620_v2 = vld [vmem:[%s2612_s5 + $0xd8] sm:$0xf0] }
 0x2d3   :  { %v1623_v3 = vor.u32 %v1825_v1, %v1620_v2  ;;  %v1539_v1 = vor.u32 %v1807_v63, %v1538_v62  ;;  %v1805_v2 = vld [vmem:[%s2612_s5 + $0x2c] sm:$0xf]  ;;  %v1836_v63 = vld [vmem:[%s2614_s7 + $0x20] sm:$0xff] }
 0x2d4   :  { %510 = vmatmul.bf16.vlgmr.msrb.gmra.mxu0 %v432_v4  ;;  %v1594_v4 = vld [vmem:[%s2612_s5 + $0xa0] sm:$0xf] }
 0x2d5   :  { %886 = vmatpush.bf16.msra.mxu0 %v1623_v3  ;;  %v1540_v3 = vld [vmem:[%s2612_s5 + $0x38] sm:$0xf0] }
 0x2d9   :  { %v427_v5 = vpop.f32.mrf.mxu3 }
 0x2e1   :  { %v429_v6 = vpop.f32.mrf.mxu3 }
 0x2e2   :  { %v433_v7 = vpack.c.bf16 %v429_v6, %v427_v5  ;;  %v1822_v5 = vld [vmem:[%s2612_s5 + $0xac] sm:$0xf0]  ;;  %v1820_v6 = vld [vmem:[%s2612_s5 + $0xa4] sm:$0xf] }
 0x2e4   :  { %515 = vmatmul.bf16.gmra.mxu0 %v433_v7  ;;  %v1595_v7 = vor.u32 %v1822_v5, %v1594_v4  ;;  %v1543_v4 = vor.u32 %v1805_v2, %v1540_v3  ;;  %v1514_v5 = vld [vmem:[%s2612_s5] sm:$0xf] }
 0x2e6   :  { %830 = vmatpush.bf16.msrb.mxu1 %v1595_v7  ;;  %v1800_v7 = vld [vmem:[%s2612_s5 + $0x4] sm:$0xf] }
 0x351   :  { %v511_v9 = vpop.f32.mrf.mxu0 }
 0x352   :  { %v512_v54 = vadd.f32 %v1884_v8, %v511_v9  ;;  %v1602_v9 = vld [vmem:[%s2612_s5 + $0xa8] sm:$0xf] }
 0x354   :  { %v521_v59 = vadd.f32 %v512_v54, %v2108_v50  ;;  %v534_v50 = vmul.f32 128.0, %v1903_v20  ;;  %v1823_v54 = vld [vmem:[%s2612_s5 + $0xb4] sm:$0xf0] }
 0x356   :  { %525 = vadd.xlane.f32.xlu2 %v521_v59  ;;  %v535_v21 = vsub.f32 1.0, %v534_v50 }
 0x358   :  { %v536_v22 = vmul.f32 %v1903_v20, %v535_v21 }
 0x359   :  { %v513_v10 = vpop.f32.mrf.mxu0 }
 0x35a   :  { %v514_v11 = vadd.f32 %v1884_v8, %v513_v10  ;;  %v537_v23 = vadd.f32 %v1903_v20, %v536_v22  ;;  %v1603_v10 = vor.u32 %v1823_v54, %v1602_v9  ;;  %v1817_v22 = vld [vmem:[%s2612_s5 + $0x8c] sm:$0xf]  ;;  %v1516_v9 = vld [vmem:[%s2612_s5 + $0x10] sm:$0xf0]  ;;  %v1522_v54 = vld [vmem:[%s2612_s5 + $0x8] sm:$0xf] }
 0x35c   :  { %v522_v12 = vadd.f32 %v514_v11, %v2110_v51  ;;  %v2225_v51 = vsel %vm538_vm1, %v1903_v20, %v537_v23  ;;  %v1821_v11 = vld [vmem:[%s2612_s5 + $0xac] sm:$0xf]  ;;  %868 = vmatpush.bf16.msra.mxu3 %v1603_v10  ;;  %v1819_v20 = vld [vmem:[%s2612_s5 + $0x94] sm:$0xf0]  ;;  %v1588_v23 = vld [vmem:[%s2612_s5 + $0x98] sm:$0xf0]  ;;  %v1519_v10 = vor.u32 %v1800_v7, %v1516_v9 }
 0x35d   :  { %v1587_v21 = vor.u32 %v1819_v20, %v1586_v19 }
 0x35e   :  { %527 = vadd.xlane.f32.xlu0 %v522_v12 }
 0x360   :  { %869 = vmatpush.bf16.msra.mxu3 %v1587_v21 }
 0x361   :  { %v516_v13 = vpop.f32.mrf.mxu0 }
 0x362   :  { %v517_v14 = vadd.f32 %v1884_v8, %v516_v13 }
 0x364   :  { %v523_v15 = vadd.f32 %v517_v14, %v2124_v57  ;;  %v1578_v14 = vld [vmem:[%s2612_s5 + $0x80] sm:$0xf] }
 0x366   :  { %529 = vadd.xlane.f32.xlu1 %v523_v15 }
 0x369   :  { %v518_v16 = vpop.f32.mrf.mxu0 }
 0x36a   :  { %v519_v17 = vadd.f32 %v1884_v8, %v518_v16  ;;  %v1596_v8 = vld [vmem:[%s2612_s5 + $0xb0] sm:$0xf0]  ;;  %v1816_v16 = vld [vmem:[%s2612_s5 + $0x84] sm:$0xf] }
 0x36c   :  { %v524_v18 = vadd.f32 %v519_v17, %v2126_v58 }
 0x36e   :  { %531 = vadd.xlane.f32.xlu2 %v524_v18 }
 0x3c9   :  { %v526_v24 = vpop.xlane.xlu2 %525 }
 0x3ca   :  { %v540_v25 = vmul.f32 %v2225_v51, %v526_v24  ;;  %v1591_v24 = vor.u32 %v1817_v22, %v1588_v23 }
 0x3cc   :  { %v2228_v57 = vsub.f32 %v521_v59, %v540_v25  ;;  %v1599_v59 = vor.u32 %v1820_v6, %v1596_v8  ;;  %v1562_v25 = vld [vmem:[%s2612_s5 + $0x60] sm:$0xf]  ;;  %v1802_v6 = vld [vmem:[%s2612_s5 + $0xc] sm:$0xf0] }
 0x3cd   :  { %v1515_v8 = vor.u32 %v1802_v6, %v1514_v5 }
 0x3ce   :  { %v548_v26 = vmul.f32 %v2228_v57, %v2228_v57  ;;  %849 = vmatpush.bf16.msrb.mxu2 %v1599_v59  ;;  %v1803_v59 = vld [vmem:[%s2612_s5 + $0x14] sm:$0xf0] }
 0x3d0   :  { %552 = vadd.xlane.f32.xlu0 %v548_v26  ;;  %v1814_v26 = vld [vmem:[%s2612_s5 + $0x6c] sm:$0xf0] }
 0x3d1   :  { %v528_v58 = vpop.xlane.xlu0 %527 }
 0x3d2   :  { %v541_v27 = vmul.f32 %v2225_v51, %v528_v58  ;;  %v1812_v58 = vld [vmem:[%s2612_s5 + $0x64] sm:$0xf] }
 0x3d4   :  { %v2233_v28 = vsub.f32 %v522_v12, %v541_v27  ;;  %v1604_v12 = vld [vmem:[%s2612_s5 + $0xb8] sm:$0xf0]  ;;  %v1563_v27 = vor.u32 %v1814_v26, %v1562_v25 }
 0x3d5   :  { %v1607_v13 = vor.u32 %v1821_v11, %v1604_v12  ;;  %v1523_v11 = vor.u32 %v1803_v59, %v1522_v54  ;;  %v1801_v12 = vld [vmem:[%s2612_s5 + $0xc] sm:$0xf]  ;;  %v1839_v26 = vld [vmem:[%s2614_s7 + $0x38] sm:$0xff] }
 0x3d6   :  { %v549_v29 = vmul.f32 %v2233_v28, %v2233_v28 }
 0x3d7   :  { %887 = vmatpush.bf16.msra.mxu0 %v1607_v13  ;;  %v1524_v13 = vld [vmem:[%s2612_s5 + $0x18] sm:$0xf0] }
 0x3d8   :  { %554 = vadd.xlane.f32.xlu1 %v549_v29  ;;  %v1564_v29 = vld [vmem:[%s2612_s5 + $0x70] sm:$0xf0] }
 0x3d9   :  { %v530_v30 = vpop.xlane.xlu1 %529 }
 0x3da   :  { %v542_v31 = vmul.f32 %v2225_v51, %v530_v30  ;;  %v1570_v30 = vld [vmem:[%s2612_s5 + $0x68] sm:$0xf] }
 0x3db   :  { %888 = vmatpush.bf16.msra.mxu0 %v1591_v24 }
 0x3dc   :  { %v2238_v32 = vsub.f32 %v523_v15, %v542_v31  ;;  %v1818_v15 = vld [vmem:[%s2612_s5 + $0x8c] sm:$0xf0]  ;;  %v1815_v31 = vld [vmem:[%s2612_s5 + $0x74] sm:$0xf0] }
 0x3dd   :  { %v1579_v17 = vor.u32 %v1818_v15, %v1578_v14  ;;  %v1527_v14 = vor.u32 %v1801_v12, %v1524_v13 }
 0x3de   :  { %v550_v33 = vmul.f32 %v2238_v32, %v2238_v32 }
 0x3df   :  { %831 = vmatpush.bf16.msrb.mxu1 %v1579_v17 }
 0x3e0   :  { %556 = vadd.xlane.f32.xlu2 %v550_v33  ;;  %v1567_v33 = vor.u32 %v1812_v58, %v1564_v29  ;;  %v2447_v58 = vld [vmem:[%s2614_s7 + $0xf8] sm:$0xff] }
 0x3e1   :  { %v532_v34 = vpop.xlane.xlu2 %531  ;;  %v1847_v29 = vld [vmem:[%s2614_s7 + $0x78] sm:$0xff] }
 0x3e2   :  { %v543_v35 = vmul.f32 %v2225_v51, %v532_v34  ;;  %v1571_v34 = vor.u32 %v1815_v31, %v1570_v30 }
 0x3e3   :  { %832 = vmatpush.bf16.msrb.mxu1 %v1563_v27 }
 0x3e4   :  { %v2243_v36 = vsub.f32 %v524_v18, %v543_v35  ;;  %v1580_v18 = vld [vmem:[%s2612_s5 + $0x90] sm:$0xf0]  ;;  %v1813_v35 = vld [vmem:[%s2612_s5 + $0x6c] sm:$0xf]  ;;  %870 = vmatpush.bf16.msra.mxu3 %v1571_v34 }
 0x3e5   :  { %v1583_v50 = vor.u32 %v1816_v16, %v1580_v18  ;;  %v2460_v34 = vld [vmem:[%s2614_s7 + $0xf0] sm:$0xff] }
 0x3e6   :  { %v551_v37 = vmul.f32 %v2243_v36, %v2243_v36 }
 0x3e7   :  { %850 = vmatpush.bf16.msrb.mxu2 %v1583_v50  ;;  %833 = vmatpush.bf16.msrb.mxu1 %v1547_v42 }
 0x3e8   :  { %558 = vadd.xlane.f32.xlu0 %v551_v37  ;;  %v1572_v37 = vld [vmem:[%s2612_s5 + $0x78] sm:$0xf0]  ;;  %871 = vmatpush.bf16.msra.mxu3 %v1555_v47  ;;  %v2478_v47 = vld [vmem:[%s2614_s7 + $0xe8] sm:$0xff] }
 0x3e9   :  { %v1575_v38 = vor.u32 %v1813_v35, %v1572_v37  ;;  %v1846_v37 = vld [vmem:[%s2614_s7 + $0x70] sm:$0xff] }
 0x3eb   :  { %851 = vmatpush.bf16.msrb.mxu2 %v1567_v33  ;;  %889 = vmatpush.bf16.msra.mxu0 %v1575_v38  ;;  %v1838_v33 = vld [vmem:[%s2614_s7 + $0x30] sm:$0xff]  ;;  %v1851_v38 = vld [vmem:[%s2614_s7 + $0x98] sm:$0xff] }
 0x3ec   :  { %834 = vmatpush.bf16.msrb.mxu1 %v1531_v60  ;;  %872 = vmatpush.bf16.msra.mxu3 %v1539_v1 }
 0x3ef   :  { %852 = vmatpush.bf16.msrb.mxu2 %v1551_v46  ;;  %890 = vmatpush.bf16.msra.mxu0 %v1559_v52  ;;  %v1837_v46 = vld [vmem:[%s2614_s7 + $0x28] sm:$0xff] }
 0x3f0   :  { %835 = vmatpush.bf16.msrb.mxu1 %v1515_v8  ;;  %873 = vmatpush.bf16.msra.mxu3 %v1523_v11  ;;  %v1845_v52 = vld [vmem:[%s2614_s7 + $0x68] sm:$0xff] }
 0x3f3   :  { %853 = vmatpush.bf16.msrb.mxu2 %v1535_v0  ;;  %891 = vmatpush.bf16.msra.mxu0 %v1543_v4  ;;  %v2491_v0 = vld [vmem:[%s2614_s7 + $0xe0] sm:$0xff] }
 0x3f4   :  { %1188 = vmatpush.bf16.msra.mxu1 %v1839_v26  ;;  %v1842_v26 = vld [vmem:[%s2614_s7 + $0x50] sm:$0xff] }
 0x3f7   :  { %854 = vmatpush.bf16.msrb.mxu2 %v1519_v10  ;;  %892 = vmatpush.bf16.msra.mxu0 %v1527_v14 }
 0x3f8   :  { %1189 = vmatpush.bf16.msra.mxu1 %v1838_v33  ;;  %v1853_v33 = vld [vmem:[%s2614_s7 + $0xa8] sm:$0xff] }
 0x3fb   :  { %1245 = vmatpush.bf16.msrb.mxu0 %v2447_v58  ;;  %1207 = vmatpush.bf16.msra.mxu2 %v1847_v29  ;;  %v1832_v29 = vld [vmem:[%s2614_s7] sm:$0xff] }
 0x3fc   :  { %1190 = vmatpush.bf16.msra.mxu1 %v1837_v46 }
 0x3ff   :  { %1246 = vmatpush.bf16.msrb.mxu0 %v2460_v34  ;;  %1208 = vmatpush.bf16.msra.mxu2 %v1846_v37  ;;  %v1852_v37 = vld [vmem:[%s2614_s7 + $0xa0] sm:$0xff] }
 0x400   :  { %1191 = vmatpush.bf16.msra.mxu1 %v1836_v63 }
 0x403   :  { %1247 = vmatpush.bf16.msrb.mxu0 %v2478_v47  ;;  %1209 = vmatpush.bf16.msra.mxu2 %v1845_v52 }
 0x407   :  { %1248 = vmatpush.bf16.msrb.mxu0 %v2491_v0 }
 0x443   :  { %v553_v15 = vpop.xlane.xlu0 %552 }
 0x444   :  { %v560_v16 = vmul.f32 0.007874016, %v553_v15 }
 0x446   :  { %1904 = vrcp.f32 %v560_v16  ;;  %v575_v30 = vand.u32 2147483648, %v560_v16  ;;  %vm569_vm3 = vweird.f32 %v560_v16  ;;  %v573_v35 = vand.u32 2147483647, %v560_v16 }
 0x448   :  { %v576_v43 = vor.u32 1.1754944e-38, %v575_v30  ;;  %vm574_vm8 = vcmp.eq.f32.partialorder %v573_v35, 8.507059e+37  ;;  %v1856_v30 = vld [vmem:[%s2614_s7 + $0xc0] sm:$0xff] }
 0x449   :  { %v1840_v35 = vld [vmem:[%s2614_s7 + $0x40] sm:$0xff] }
 0x44b   :  { %v555_v17 = vpop.xlane.xlu1 %554 }
 0x44c   :  { %v1905_v18 = vpop.eup %1904  ;;  %v561_v19 = vmul.f32 0.007874016, %v555_v17 }
 0x44d   :  { %v565_v20 = vmul.f32 %v1905_v18, %v560_v16  ;;  %vm570_vm2 = vweird.f32 %v1905_v18 }
 0x44e   :  { %1906 = vrcp.f32 %v561_v19  ;;  %vm2465_vm4 = vmor %vm569_vm3, %vm570_vm2  ;;  %v589_v40 = vand.u32 2147483648, %v561_v19  ;;  %v587_v41 = vand.u32 2147483647, %v561_v19  ;;  %vm583_vm6 = vweird.f32 %v561_v19 }
 0x44f   :  { %v566_v50 = vsub.f32 1.0, %v565_v20  ;;  %v1835_v20 = vld [vmem:[%s2614_s7 + $0x18] sm:$0xff] }
 0x450   :  { %v590_v53 = vor.u32 1.1754944e-38, %v589_v40  ;;  %vm588_vm9 = vcmp.eq.f32.partialorder %v587_v41, 8.507059e+37  ;;  %1192 = vmatpush.bf16.msra.mxu1 %v1835_v20 }
 0x451   :  { %v567_v21 = vmul.f32 %v1905_v18, %v566_v50  ;;  %v1859_v50 = vld [vmem:[%s2614_s7 + $0xd8] sm:$0xff] }
 0x452   :  { %1249 = vmatpush.bf16.msrb.mxu0 %v1859_v50 }
 0x453   :  { %v557_v22 = vpop.xlane.xlu2 %556  ;;  %v568_v27 = vadd.f32 %v1905_v18, %v567_v21  ;;  %v1858_v21 = vld [vmem:[%s2614_s7 + $0xd0] sm:$0xff] }
 0x454   :  { %v1907_v23 = vpop.eup %1906  ;;  %v2439_v24 = vmul.f32 0.007874016, %v557_v22  ;;  %v1843_v22 = vld [vmem:[%s2614_s7 + $0x58] sm:$0xff] }
 0x455   :  { %v579_v25 = vmul.f32 %v1907_v23, %v561_v19  ;;  %vm584_vm5 = vweird.f32 %v1907_v23  ;;  %v572_v42 = vsel %vm2465_vm4, %v1905_v18, %v568_v27  ;;  %v1854_v27 = vld [vmem:[%s2614_s7 + $0xb0] sm:$0xff] }
 0x456   :  { %1908 = vrcp.f32 %v2439_v24  ;;  %vm585_vm7 = vmor %vm583_vm6, %vm584_vm5  ;;  %v577_v56 = vsel %vm574_vm8, %v576_v43, %v572_v42  ;;  %v603_v7 = vand.u32 2147483648, %v2439_v24  ;;  %vm597_vm11 = vweird.f32 %v2439_v24  ;;  %1250 = vmatpush.bf16.msrb.mxu0 %v1858_v21  ;;  %v1848_v42 = vld [vmem:[%s2614_s7 + $0x80] sm:$0xff] }
 0x457   :  { %v580_v31 = vsub.f32 1.0, %v579_v25  ;;  %v2494_v1 = vmul.f32 %v577_v56, %v2228_v57  ;;  %v1857_v25 = vld [vmem:[%s2614_s7 + $0xc8] sm:$0xff] }
 0x458   :  { %v604_v11 = vor.u32 1.1754944e-38, %v603_v7 }
 0x459   :  { %v581_v39 = vmul.f32 %v1907_v23, %v580_v31  ;;  %v1841_v31 = vld [vmem:[%s2614_s7 + $0x48] sm:$0xff] }
 0x45a   :  { %1251 = vmatpush.bf16.msrb.mxu0 %v1857_v25 }
 0x45b   :  { %v559_v44 = vpop.xlane.xlu0 %558  ;;  %v582_v45 = vadd.f32 %v1907_v23, %v581_v39  ;;  %v658_v39 = vld [vmem:[%s2613_s6] sm:$0xf] }
 0x45c   :  { %v1909_v48 = vpop.eup %1908  ;;  %v563_v49 = vmul.f32 0.007874016, %v559_v44  ;;  %v660_v43 = vperm.slane %v658_v39, 0  ;;  %v663_v44 = vperm.slane %v658_v39, 3  ;;  %v661_v52 = vperm.slane %v658_v39, 1 }
 0x45d   :  { %v593_v55 = vmul.f32 %v1909_v48, %v2439_v24  ;;  %v586_v60 = vsel %vm585_vm7, %v1907_v23, %v582_v45  ;;  %vm598_vm10 = vweird.f32 %v1909_v48  ;;  %v1855_v23 = vld [vmem:[%s2614_s7 + $0xb8] sm:$0xff] }
 0x45e   :  { %1910 = vrcp.f32 %v563_v49  ;;  %v591_v62 = vsel %vm588_vm9, %v590_v53, %v586_v60  ;;  %vm599_vm12 = vmor %vm597_vm11, %vm598_vm10  ;;  %v617_v9 = vand.u32 2147483648, %v563_v49  ;;  %v615_v59 = vand.u32 2147483647, %v563_v49  ;;  %1864 = vmatpush.bf16.msrb.mxu3 %v1855_v23  ;;  %1252 = vmatpush.bf16.msrb.mxu0 %v1856_v30 }
 0x45f   :  { %v594_v61 = vsub.f32 1.0, %v593_v55  ;;  %v2497_v2 = vmul.f32 %v591_v62, %v2233_v28  ;;  %v601_v28 = vand.u32 2147483647, %v2439_v24  ;;  %vm611_vm14 = vweird.f32 %v563_v49  ;;  %v1833_v24 = vld [vmem:[%s2614_s7 + $0x8] sm:$0xff] }
 0x460   :  { %v618_v13 = vor.u32 1.1754944e-38, %v617_v9  ;;  %vm616_vm1 = vcmp.eq.f32.partialorder %v615_v59, 8.507059e+37 }
 0x461   :  { %v595_v3 = vmul.f32 %v1909_v48, %v594_v61  ;;  %v624_v4 = vpack.c.bf16 %v2497_v2, %v2494_v1  ;;  %vm602_vm15 = vcmp.eq.f32.partialorder %v601_v28, 8.507059e+37 }
 0x462   :  { %1865 = vmatpush.bf16.msrb.mxu3 %v1854_v27 }
 0x463   :  { %836 = vmatmul.bf16.vlgmr.msrb.gmra.mxu1 %v624_v4  ;;  %855 = vmatmul.bf16.vlgmr.msrb.gmra.mxu2 %v624_v4  ;;  %v596_v57 = vadd.f32 %v1909_v48, %v595_v3 }
 0x464   :  { %v1911_v5 = vpop.eup %1910  ;;  %874 = vmatmul.bf16.vlgmr.msra.gmra.mxu3 %v624_v4  ;;  %893 = vmatmul.bf16.vlgmr.msra.gmra.mxu0 %v624_v4 }
 0x465   :  { %v607_v6 = vmul.f32 %v1911_v5, %v563_v49  ;;  %vm612_vm13 = vweird.f32 %v1911_v5  ;;  %v600_v10 = vsel %vm599_vm12, %v1909_v48, %v596_v57 }
 0x466   :  { %vm613_vm0 = vmor %vm611_vm14, %vm612_vm13  ;;  %v605_v14 = vsel %vm602_vm15, %v604_v11, %v600_v10  ;;  %1866 = vmatpush.bf16.msrb.mxu3 %v1853_v33 }
 0x467   :  { %v608_v8 = vsub.f32 1.0, %v607_v6  ;;  %v2506_v17 = vmul.f32 %v605_v14, %v2238_v32  ;;  %v1844_v32 = vld [vmem:[%s2614_s7 + $0x60] sm:$0xff] }
 0x468   :  { %1210 = vmatpush.bf16.msra.mxu2 %v1844_v32 }
 0x469   :  { %v609_v54 = vmul.f32 %v1911_v5, %v608_v8 }
 0x46a   :  { %1867 = vmatpush.bf16.msrb.mxu3 %v1852_v37 }
 0x46b   :  { %v610_v12 = vadd.f32 %v1911_v5, %v609_v54 }
 0x46c   :  { %1211 = vmatpush.bf16.msra.mxu2 %v1843_v22 }
 0x46d   :  { %v614_v15 = vsel %vm613_vm0, %v1911_v5, %v610_v12 }
 0x46e   :  { %v619_v16 = vsel %vm616_vm1, %v618_v13, %v614_v15  ;;  %1868 = vmatpush.bf16.msrb.mxu3 %v1851_v38 }
 0x46f   :  { %v2509_v18 = vmul.f32 %v619_v16, %v2243_v36  ;;  %v1834_v36 = vld [vmem:[%s2614_s7 + $0x10] sm:$0xff]  ;;  %v662_v16 = vperm.slane %v658_v39, 2 }
 0x470   :  { %1193 = vmatpush.bf16.msra.mxu1 %v1834_v36  ;;  %1212 = vmatpush.bf16.msra.mxu2 %v1842_v26 }
 0x471   :  { %v625_v19 = vpack.c.bf16 %v2509_v18, %v2506_v17 }
 0x473   :  { %841 = vmatmul.bf16.gmra.mxu1 %v625_v19  ;;  %860 = vmatmul.bf16.gmra.mxu2 %v625_v19 }
 0x474   :  { %879 = vmatmul.bf16.gmra.mxu3 %v625_v19  ;;  %898 = vmatmul.bf16.gmra.mxu0 %v625_v19 }
 0x475   :  { %1194 = vmatpush.bf16.msra.mxu1 %v1833_v24  ;;  %1213 = vmatpush.bf16.msra.mxu2 %v1841_v31 }
 0x479   :  { %1195 = vmatpush.bf16.msra.mxu1 %v1832_v29  ;;  %1214 = vmatpush.bf16.msra.mxu2 %v1840_v35 }
 0x47d   :  { %1872 = vmatpush.bf16.msrb.mxu1 %v2447_v58  ;;  %1226 = vmatpush.bf16.msrb.mxu2 %v1855_v23  ;;  %v1850_v58 = vld [vmem:[%s2614_s7 + $0x90] sm:$0xff] }
 0x47e   :  { %1869 = vmatpush.bf16.msrb.mxu3 %v1850_v58 }
 0x481   :  { %1873 = vmatpush.bf16.msrb.mxu1 %v2460_v34  ;;  %1227 = vmatpush.bf16.msrb.mxu2 %v1854_v27  ;;  %v1849_v34 = vld [vmem:[%s2614_s7 + $0x88] sm:$0xff] }
 0x482   :  { %1870 = vmatpush.bf16.msrb.mxu3 %v1849_v34 }
 0x485   :  { %1874 = vmatpush.bf16.msrb.mxu1 %v2478_v47  ;;  %1228 = vmatpush.bf16.msrb.mxu2 %v1853_v33 }
 0x486   :  { %1871 = vmatpush.bf16.msrb.mxu3 %v1848_v42 }
 0x489   :  { %1875 = vmatpush.bf16.msrb.mxu1 %v2491_v0  ;;  %1229 = vmatpush.bf16.msrb.mxu2 %v1852_v37 }
 0x48d   :  { %1876 = vmatpush.bf16.msrb.mxu1 %v1859_v50  ;;  %1230 = vmatpush.bf16.msrb.mxu2 %v1851_v38 }
 0x491   :  { %1877 = vmatpush.bf16.msrb.mxu1 %v1858_v21  ;;  %1231 = vmatpush.bf16.msrb.mxu2 %v1850_v58 }
 0x495   :  { %1878 = vmatpush.bf16.msrb.mxu1 %v1857_v25  ;;  %1232 = vmatpush.bf16.msrb.mxu2 %v1849_v34 }
 0x499   :  { %1879 = vmatpush.bf16.msrb.mxu1 %v1856_v30  ;;  %1233 = vmatpush.bf16.msrb.mxu2 %v1848_v42 }
 0x4e0   :  { %v837_v40 = vpop.f32.mrf.mxu1 }
 0x4e1   :  { %v894_v41 = vpop.f32.mrf.mxu0  ;;  %v838_v46 = vadd.f32 %v837_v40, %v660_v43 }
 0x4e2   :  { %v895_v48 = vadd.f32 %v894_v41, %v663_v44 }
 0x4e3   :  { %v904_v60 = vmax.f32 %v838_v46, 0.0 }
 0x4e4   :  { %v907_v62 = vmax.f32 %v895_v48, 0.0 }
 0x4e6   :  { %v856_v45 = vpop.f32.mrf.mxu2 }
 0x4e7   :  { %v875_v47 = vpop.f32.mrf.mxu3  ;;  %v857_v0 = vadd.f32 %v856_v45, %v661_v52 }
 0x4e8   :  { %v839_v49 = vpop.f32.mrf.mxu1  ;;  %v876_v58 = vadd.f32 %v875_v47, %v662_v16 }
 0x4e9   :  { %v840_v53 = vadd.f32 %v839_v49, %v660_v43  ;;  %v896_v55 = vpop.f32.mrf.mxu0  ;;  %v905_v28 = vmax.f32 %v857_v0, 0.0 }
 0x4ea   :  { %v897_v56 = vadd.f32 %v896_v55, %v663_v44  ;;  %v906_v40 = vmax.f32 %v876_v58, 0.0 }
 0x4eb   :  { %v908_v61 = vmax.f32 %v840_v53, 0.0 }
 0x4ec   :  { %v911_v63 = vmax.f32 %v897_v56, 0.0 }
 0x4ed   :  { %v920_v3 = vpack.c.bf16 %v908_v61, %v904_v60 }
 0x4ee   :  { %v923_v4 = vpack.c.bf16 %v911_v63, %v907_v62  ;;  %v858_v5 = vpop.f32.mrf.mxu2 }
 0x4ef   :  { %v859_v6 = vadd.f32 %v858_v5, %v661_v52  ;;  %v877_v57 = vpop.f32.mrf.mxu3  ;;  %1196 = vmatmul.bf16.vlgmr.msra.gmra.mxu1 %v920_v3 }
 0x4f0   :  { %1253 = vmatmul.bf16.vlgmr.msrb.gmra.mxu0 %v923_v4  ;;  %v842_v7 = vpop.f32.mrf.mxu1  ;;  %v878_v37 = vadd.f32 %v877_v57, %v662_v16 }
 0x4f1   :  { %v909_v8 = vmax.f32 %v859_v6, 0.0  ;;  %v843_v59 = vadd.f32 %v842_v7, %v660_v43  ;;  %v899_v11 = vpop.f32.mrf.mxu0 }
 0x4f2   :  { %v900_v33 = vadd.f32 %v899_v11, %v663_v44  ;;  %v910_v39 = vmax.f32 %v878_v37, 0.0 }
 0x4f3   :  { %v921_v9 = vpack.c.bf16 %v909_v8, %v905_v28  ;;  %v912_v14 = vmax.f32 %v843_v59, 0.0 }
 0x4f4   :  { %v915_v38 = vmax.f32 %v900_v33, 0.0  ;;  %v922_v41 = vpack.c.bf16 %v910_v39, %v906_v40 }
 0x4f5   :  { %1215 = vmatmul.bf16.vlgmr.msra.gmra.mxu2 %v921_v9 }
 0x4f6   :  { %v861_v54 = vpop.f32.mrf.mxu2 }
 0x4f7   :  { %v880_v10 = vpop.f32.mrf.mxu3  ;;  %v862_v19 = vadd.f32 %v861_v54, %v661_v52 }
 0x4f8   :  { %v844_v12 = vpop.f32.mrf.mxu1  ;;  %v881_v50 = vadd.f32 %v880_v10, %v662_v16 }
 0x4f9   :  { %v845_v13 = vadd.f32 %v844_v12, %v660_v43  ;;  %v913_v23 = vmax.f32 %v862_v19, 0.0  ;;  %v901_v26 = vpop.f32.mrf.mxu0 }
 0x4fa   :  { %v914_v25 = vmax.f32 %v881_v50, 0.0  ;;  %v902_v31 = vadd.f32 %v901_v26, %v663_v44  ;;  %v1885_v44 = vld [vmem:[%s2615_s8] ss:$0 sm:$0xff]  ;;  %s1947_s8 = smov [#allocation2]  }
 0x4fb   :  { %v916_v15 = vmax.f32 %v845_v13, 0.0  ;;  %s1368_s29 = sshll.u32 %s1947_s8, 4  ;;  %s1369_s29 = int_to_ptr.vmem [resolvable:$true] %s1368_s29 }
 0x4fc   :  { %v919_v35 = vmax.f32 %v902_v31, 0.0 }
 0x4fd   :  { %v924_v20 = vpack.c.bf16 %v916_v15, %v912_v14 }
 0x4fe   :  { %v863_v32 = vpop.f32.mrf.mxu2  ;;  %v927_v34 = vpack.c.bf16 %v919_v35, %v915_v38 }
 0x4ff   :  { %v864_v36 = vadd.f32 %v863_v32, %v661_v52  ;;  %v882_v21 = vpop.f32.mrf.mxu3  ;;  %1201 = vmatmul.bf16.gmra.mxu1 %v924_v20 }
 0x500   :  { %v883_v22 = vadd.f32 %v882_v21, %v662_v16 }
 0x501   :  { %v917_v24 = vmax.f32 %v864_v36, 0.0 }
 0x502   :  { %v918_v27 = vmax.f32 %v883_v22, 0.0 }
 0x503   :  { %v925_v29 = vpack.c.bf16 %v917_v24, %v913_v23 }
 0x504   :  { %v926_v30 = vpack.c.bf16 %v918_v27, %v914_v25 }
 0x505   :  { %1220 = vmatmul.bf16.gmra.mxu2 %v925_v29 }
 0x506   :  { %1239 = vmatmul.bf16.vlgmr.msrb.gmra.mxu3 %v926_v30 }
 0x50f   :  { %1258 = vmatmul.bf16.vlgmr.msrb.gmra.mxu1 %v927_v34 }
 0x515   :  { %1234 = vmatmul.bf16.vlgmr.msrb.gmra.mxu2 %v922_v41 }
 0x56c   :  { %v1197_v42 = vpop.f32.mrf.mxu1 }
 0x56d   :  { %v1198_v0 = vadd.f32 %v1885_v44, %v1197_v42  ;;  %v1254_v5 = vpop.f32.mrf.mxu0 }
 0x574   :  { %v1199_v43 = vpop.f32.mrf.mxu1 }
 0x575   :  { %v1200_v9 = vadd.f32 %v1885_v44, %v1199_v43  ;;  %v1256_v14 = vpop.f32.mrf.mxu0 }
 0x578   :  { %v1216_v45 = vpop.f32.mrf.mxu2 }
 0x579   :  { %v1217_v3 = vadd.f32 %v1216_v45, %v1198_v0 }
 0x57c   :  { %v1202_v46 = vpop.f32.mrf.mxu1 }
 0x57d   :  { %v1203_v52 = vadd.f32 %v1885_v44, %v1202_v46 }
 0x580   :  { %v1218_v48 = vpop.f32.mrf.mxu2 }
 0x581   :  { %v1219_v11 = vadd.f32 %v1218_v48, %v1200_v9 }
 0x584   :  { %v1204_v49 = vpop.f32.mrf.mxu1 }
 0x585   :  { %v1205_v4 = vadd.f32 %v1885_v44, %v1204_v49 }
 0x588   :  { %v1221_v53 = vpop.f32.mrf.mxu2 }
 0x589   :  { %v1222_v55 = vadd.f32 %v1221_v53, %v1203_v52  ;;  %v1240_v47 = vpop.f32.mrf.mxu3 }
 0x58b   :  { %v1241_v56 = vadd.f32 %v1240_v47, %v1222_v55 }
 0x58c   :  { %v1259_v60 = vpop.f32.mrf.mxu1 }
 0x58d   :  { %v1260_v61 = vadd.f32 %v1259_v60, %v1241_v56 }
 0x58f   :  { %v1266_v62 = vadd.f32 %v1260_v61, %v2506_v17 }
 0x590   :  { %v1223_v63 = vpop.f32.mrf.mxu2 }
 0x591   :  { %1272 = vadd.xlane.f32.xlu0 %v1266_v62  ;;  %v1224_v57 = vadd.f32 %v1223_v63, %v1205_v4  ;;  %v1242_v8 = vpop.f32.mrf.mxu3 }
 0x593   :  { %v1243_v54 = vadd.f32 %v1242_v8, %v1224_v57 }
 0x594   :  { %v1261_v10 = vpop.f32.mrf.mxu1 }
 0x595   :  { %v1262_v17 = vadd.f32 %v1261_v10, %v1243_v54 }
 0x597   :  { %v1267_v19 = vadd.f32 %v1262_v17, %v2509_v18 }
 0x598   :  { %v1235_v6 = vpop.f32.mrf.mxu2 }
 0x599   :  { %v1236_v7 = vadd.f32 %v1235_v6, %v1217_v3 }
 0x59b   :  { %v1255_v28 = vadd.f32 %v1254_v5, %v1236_v7 }
 0x59d   :  { %v1264_v59 = vadd.f32 %v1255_v28, %v2494_v1 }
 0x59f   :  { %1268 = vadd.xlane.f32.xlu1 %v1264_v59 }
 0x5a0   :  { %v1237_v12 = vpop.f32.mrf.mxu2 }
 0x5a1   :  { %v1238_v13 = vadd.f32 %v1237_v12, %v1219_v11 }
 0x5a3   :  { %v1257_v15 = vadd.f32 %v1256_v14, %v1238_v13 }
 0x5a5   :  { %v1265_v16 = vadd.f32 %v1257_v15, %v2497_v2 }
 0x5a7   :  { %1270 = vadd.xlane.f32.xlu2 %v1265_v16  ;;  %1274 = vadd.xlane.f32.xlu1 %v1267_v19 }
 0x604   :  { %v1273_v20 = vpop.xlane.xlu0 %1272 }
 0x605   :  { %v1278_v50 = vmul.f32 %v1273_v20, %v2225_v51 }
 0x607   :  { %v1282_v32 = vsub.f32 %v1266_v62, %v1278_v50 }
 0x609   :  { %v1286_v36 = vmul.f32 %v1282_v32, %v1282_v32 }
 0x60b   :  { %1292 = vadd.xlane.f32.xlu1 %v1286_v36 }
 0x612   :  { %v1269_v1 = vpop.xlane.xlu1 %1268 }
 0x613   :  { %v1276_v21 = vmul.f32 %v1269_v1, %v2225_v51 }
 0x615   :  { %v1280_v22 = vsub.f32 %v1264_v59, %v1276_v21 }
 0x617   :  { %v1284_v23 = vmul.f32 %v1280_v22, %v1280_v22 }
 0x619   :  { %1288 = vadd.xlane.f32.xlu2 %v1284_v23 }
 0x61a   :  { %v1271_v24 = vpop.xlane.xlu2 %1270  ;;  %v1275_v25 = vpop.xlane.xlu1 %1274 }
 0x61b   :  { %v1277_v2 = vmul.f32 %v1271_v24, %v2225_v51  ;;  %v1279_v18 = vmul.f32 %v1275_v25, %v2225_v51 }
 0x61d   :  { %v2594_v26 = vsub.f32 %v1265_v16, %v1277_v2  ;;  %v2596_v27 = vsub.f32 %v1267_v19, %v1279_v18 }
 0x61f   :  { %v1285_v29 = vmul.f32 %v2594_v26, %v2594_v26  ;;  %v1287_v30 = vmul.f32 %v2596_v27, %v2596_v27 }
 0x621   :  { %1290 = vadd.xlane.f32.xlu0 %v1285_v29  ;;  %1294 = vadd.xlane.f32.xlu2 %v1287_v30 }
 0x67e   :  { %v1293_v31 = vpop.xlane.xlu1 %1292 }
 0x67f   :  { %v1298_v33 = vmul.f32 0.007874016, %v1293_v31 }
 0x681   :  { %1912 = vrcp.f32 %v1298_v33  ;;  %v1339_v58 = vand.u32 2147483648, %v1298_v33  ;;  %v1337_v34 = vand.u32 2147483647, %v1298_v33  ;;  %vm1333_vm3 = vweird.f32 %v1298_v33 }
 0x683   :  { %v1340_v42 = vor.u32 1.1754944e-38, %v1339_v58  ;;  %vm1338_vm5 = vcmp.eq.f32.partialorder %v1337_v34, 8.507059e+37 }
 0x687   :  { %v1913_v35 = vpop.eup %1912 }
 0x688   :  { %v1329_v37 = vmul.f32 %v1913_v35, %v1298_v33  ;;  %vm1334_vm2 = vweird.f32 %v1913_v35 }
 0x689   :  { %vm1335_vm4 = vmor %vm1333_vm3, %vm1334_vm2 }
 0x68a   :  { %v1330_v38 = vsub.f32 1.0, %v1329_v37 }
 0x68c   :  { %v1331_v51 = vmul.f32 %v1913_v35, %v1330_v38  ;;  %v1289_v39 = vpop.xlane.xlu2 %1288 }
 0x68d   :  { %v1296_v40 = vmul.f32 0.007874016, %v1289_v39 }
 0x68e   :  { %v1332_v41 = vadd.f32 %v1913_v35, %v1331_v51 }
 0x68f   :  { %1914 = vrcp.f32 %v1296_v40  ;;  %v1311_v56 = vand.u32 2147483648, %v1296_v40  ;;  %v1309_v61 = vand.u32 2147483647, %v1296_v40  ;;  %vm1305_vm7 = vweird.f32 %v1296_v40 }
 0x690   :  { %v1336_v43 = vsel %vm1335_vm4, %v1913_v35, %v1332_v41 }
 0x691   :  { %v1341_v45 = vsel %vm1338_vm5, %v1340_v42, %v1336_v43  ;;  %v1312_v0 = vor.u32 1.1754944e-38, %v1311_v56  ;;  %vm1310_vm9 = vcmp.eq.f32.partialorder %v1309_v61, 8.507059e+37 }
 0x692   :  { %v1358_v46 = vmul.f32 %v1341_v45, %v1282_v32 }
 0x694   :  { %1362 = vst [vmem:[#allocation2 + $0x10] sm:$0xff] %v1358_v46  ;;  %v1291_v48 = vpop.xlane.xlu0 %1290  ;;  %v1295_v49 = vpop.xlane.xlu2 %1294 }
 0x695   :  { %v1915_v44 = vpop.eup %1914  ;;  %v1297_v52 = vmul.f32 0.007874016, %v1291_v48  ;;  %v1299_v53 = vmul.f32 0.007874016, %v1295_v49 }
 0x696   :  { %v1301_v55 = vmul.f32 %v1915_v44, %v1296_v40  ;;  %vm1306_vm6 = vweird.f32 %v1915_v44 }
 0x697   :  { %1916 = vrcp.f32 %v1297_v52  ;;  %vm1307_vm8 = vmor %vm1305_vm7, %vm1306_vm6  ;;  %v1325_v8 = vand.u32 2147483648, %v1297_v52  ;;  %v1323_v59 = vand.u32 2147483647, %v1297_v52  ;;  %v1353_v10 = vand.u32 2147483648, %v1299_v53 }
 0x698   :  { %v1302_v47 = vsub.f32 1.0, %v1301_v55  ;;  %1918 = vrcp.f32 %v1299_v53  ;;  %v1351_v12 = vand.u32 2147483647, %v1299_v53  ;;  %vm1319_vm12 = vweird.f32 %v1297_v52 }
 0x699   :  { %v1326_v13 = vor.u32 1.1754944e-38, %v1325_v8  ;;  %vm1347_vm14 = vweird.f32 %v1299_v53  ;;  %vm1324_vm15 = vcmp.eq.f32.partialorder %v1323_v59, 8.507059e+37  ;;  %v1354_v16 = vor.u32 1.1754944e-38, %v1353_v10 }
 0x69a   :  { %v1303_v60 = vmul.f32 %v1915_v44, %v1302_v47  ;;  %vm1352_vm1 = vcmp.eq.f32.partialorder %v1351_v12, 8.507059e+37 }
 0x69c   :  { %v1304_v62 = vadd.f32 %v1915_v44, %v1303_v60 }
 0x69d   :  { %v1917_v63 = vpop.eup %1916 }
 0x69e   :  { %v1919_v3 = vpop.eup %1918  ;;  %v1308_v4 = vsel %vm1307_vm8, %v1915_v44, %v1304_v62  ;;  %v1315_v5 = vmul.f32 %v1917_v63, %v1297_v52  ;;  %vm1320_vm10 = vweird.f32 %v1917_v63 }
 0x69f   :  { %v1313_v6 = vsel %vm1310_vm9, %v1312_v0, %v1308_v4  ;;  %v1343_v57 = vmul.f32 %v1919_v3, %v1299_v53  ;;  %vm1348_vm11 = vweird.f32 %v1919_v3  ;;  %vm1321_vm13 = vmor %vm1319_vm12, %vm1320_vm10 }
 0x6a0   :  { %v1356_v7 = vmul.f32 %v1313_v6, %v1280_v22  ;;  %v1316_v28 = vsub.f32 1.0, %v1315_v5  ;;  %vm1349_vm0 = vmor %vm1347_vm14, %vm1348_vm11 }
 0x6a1   :  { %v1344_v9 = vsub.f32 1.0, %v1343_v57 }
 0x6a2   :  { %1360 = vst [vmem:[#allocation2] sm:$0xff] %v1356_v7  ;;  %v1317_v54 = vmul.f32 %v1917_v63, %v1316_v28 }
 0x6a3   :  { %v1345_v11 = vmul.f32 %v1919_v3, %v1344_v9 }
 0x6a4   :  { %v1318_v17 = vadd.f32 %v1917_v63, %v1317_v54 }
 0x6a5   :  { %v1346_v14 = vadd.f32 %v1919_v3, %v1345_v11 }
 0x6a6   :  { %v1322_v15 = vsel %vm1321_vm13, %v1917_v63, %v1318_v17 }
 0x6a7   :  { %v1327_v19 = vsel %vm1324_vm15, %v1326_v13, %v1322_v15  ;;  %v1350_v20 = vsel %vm1349_vm0, %v1919_v3, %v1346_v14 }
 0x6a8   :  { %v1357_v50 = vmul.f32 %v1327_v19, %v2594_v26  ;;  %v1355_v32 = vsel %vm1352_vm1, %v1354_v16, %v1350_v20 }
 0x6a9   :  { %v1359_v36 = vmul.f32 %v1355_v32, %v2596_v27 }
 0x6aa   :  { %1361 = vst [vmem:[#allocation2 + $0x8] sm:$0xff] %v1357_v50 }
 0x6ab   :  { %1363 = vst [vmem:[#allocation2 + $0x18] sm:$0xff] %v1359_v36 }
 0x6ac   :  { %1376 = dma.vmem_to_hbm [thread:$0]  %s1369_s29, 512, %s1371_s11, [#allocation3], %s1948_s12, %s1948_s12, %s1949_s13  }
 0x6ad   :  { %1944 = dma.done.wait [#allocation3], 512  }
 0x6ae   :  { %1945 = vsyncadd [#allocation3], 4294966784 }
 0x6af   :  { %1381 = vsyncpa [#allocation3], 1 }

</bundles_post_ra>
